<compile_context>
chip_gen: v7x
topology: tpu7x:2x2x1
jax: 0.10.0
libtpu: 0.0.40
codegen_flags: <defaults>
</compile_context>

<pallas_src>
import functools

import jax
import jax.numpy as jnp
from jax.experimental import pallas as pl
from jax.experimental.pallas import tpu as pltpu

IGNORE_INDEX = 255


def _ce_kernel(logits_ref, labels_ref, sum_ref, cnt_ref, acc_sum, acc_cnt,
               *, num_classes, s_total, s_tile, tiles_half):
    """One grid step handles a (1, C, s_tile, 128) logits tile.

    logits_ref : (1, C, s_tile, 128) VMEM tile, native dtype (f32 / bf16)
    labels_ref : (1, 1, s_tile, 128) int32 VMEM tile
    sum_ref    : (1, 1, 1, 128) f32 output partial (written at last step)
    cnt_ref    : (1, 1, 1, 128) i32 output partial (written at last step)
    acc_sum    : (s_tile, 128) f32 VMEM scratch accumulator
    acc_cnt    : (s_tile, 128) i32 VMEM scratch accumulator
    """
    s_id = pl.program_id(1)          # pixel-split id (feeds v7x's 2nd core)
    t_id = pl.program_id(2)          # reduction step within the split

    @pl.when(t_id == 0)
    def _():
        acc_sum[...] = jnp.zeros_like(acc_sum)
        acc_cnt[...] = jnp.zeros_like(acc_cnt)

    labels = labels_ref[0, 0]                                  # (s_tile, 128)

    # Validity mask, built once per step: real class id AND the 128-pixel row
    # belongs to this split's range (handles ragged last block + split bounds).
    g = s_id * tiles_half + t_id                               # row-block idx
    rows = g * s_tile + jax.lax.broadcasted_iota(jnp.int32, labels.shape, 0)
    split0_limit = min(tiles_half * s_tile, s_total)
    row_limit = jnp.where(s_id == 0, split0_limit, s_total)
    valid = jnp.logical_and(labels != IGNORE_INDEX, rows < row_limit)

    # Online log-sum-exp over classes, Python-unrolled: every op is a dense
    # (s_tile, 128) elementwise VPU/EUP op (no class_iota, no sublane reduce).
    row0 = logits_ref[0, 0].astype(jnp.float32)
    m = row0
    for c in range(1, num_classes):
        m = jnp.maximum(m, logits_ref[0, c].astype(jnp.float32))

    se = jnp.exp(row0 - m)
    logit_at_label = row0            # label==0 / ignored / OOB -> masked below
    for c in range(1, num_classes):
        rc = logits_ref[0, c].astype(jnp.float32)
        se = se + jnp.exp(rc - m)
        logit_at_label = jnp.where(labels == c, rc, logit_at_label)

    lse = m + jnp.log(se)
    # Select (not multiply) so inf/NaN from garbage tail rows can never leak.
    per_pixel = jnp.where(valid, lse - logit_at_label, 0.0)

    acc_sum[...] = acc_sum[...] + per_pixel
    acc_cnt[...] = acc_cnt[...] + valid.astype(jnp.int32)

    # In-kernel final reduction: one lane-dense 128-wide partial per (n, split).
    @pl.when(t_id == pl.num_programs(2) - 1)
    def _():
        sum_ref[...] = jnp.sum(acc_sum[...], axis=0, keepdims=True)[None, None]
        cnt_ref[...] = jnp.sum(acc_cnt[...], axis=0, keepdims=True)[None, None]


def _vmem_capacity_bytes():
    try:
        cap = getattr(pltpu.get_tpu_info(), "vmem_capacity_bytes", None)
        if cap:
            return int(cap)
    except Exception:
        pass
    return 64 * 1024 * 1024            # conservative: v7x per-TC VMEM


def _choose_tile_rows(s_total, num_classes, itemsize, vmem_capacity):
    """Largest pixel-row tile (rows of 128 px, multiple of 8) within budget."""
    logits_row = num_classes * 128 * itemsize     # per row, per buffer
    labels_row = 128 * 4
    acc_row = 128 * (4 + 4)                       # f32 + i32 accumulators
    interm_row = 8 * 128 * 4                      # bound on f32 temporaries
    per_row = 2 * (logits_row + labels_row) + acc_row + interm_row
    budget = int(vmem_capacity * 0.45)            # headroom for double-buffers
    s_tile = (budget // per_row) // 8 * 8
    s_tile = max(8, min(4096, s_tile))
    return s_total if s_total <= s_tile else s_tile


def _masked_ce_sums(logits_nchw, labels_nhw, *, tile_rows=None):
    """Returns (sum_of_loss f32 scalar, valid_count i32 scalar) for one head."""
    N, C, H, W = logits_nchw.shape
    HW = H * W
    s_total = pl.cdiv(HW, 128)
    hw_pad = s_total * 128

    logits = logits_nchw.reshape(N, C, HW)        # free reshape, no transpose
    labels = labels_nhw.astype(jnp.int32).reshape(N, HW)
    if hw_pad != HW:
        # Rare ragged case only: pad pixels get ignore_index so they never count.
        logits = jnp.pad(logits, ((0, 0), (0, 0), (0, hw_pad - HW)))
        labels = jnp.pad(labels, ((0, 0), (0, hw_pad - HW)),
                         constant_values=IGNORE_INDEX)
    logits4 = logits.reshape(N, C, s_total, 128)
    labels4 = labels.reshape(N, 1, s_total, 128)

    vmem_cap = _vmem_capacity_bytes()
    itemsize = jnp.dtype(logits_nchw.dtype).itemsize
    if tile_rows is None:
        s_tile = _choose_tile_rows(s_total, C, itemsize, vmem_cap)
    else:
        s_tile = min(int(tile_rows), s_total)
        if s_tile < s_total:
            assert s_tile % 8 == 0, "tile_rows must be a multiple of 8"

    n_tiles = pl.cdiv(s_total, s_tile)
    # Pixel split keeps both v7x TensorCores busy even when N == 1; costs at
    # most one fully-masked step on single-core chips (v5e/v6e).
    n_splits = 2 if n_tiles >= 2 else 1
    tiles_half = n_tiles // 2 if n_splits == 2 else n_tiles
    tiles_per_split = (n_tiles - tiles_half) if n_splits == 2 else n_tiles

    kernel = functools.partial(_ce_kernel, num_classes=C, s_total=s_total,
                               s_tile=s_tile, tiles_half=tiles_half)

    def data_map(n, s, t):
        return (n, 0, s * tiles_half + t, 0)

    def out_map(n, s, t):
        return (n, s, 0, 0)

    sum_out, cnt_out = pl.pallas_call(
        kernel,
        out_shape=(jax.ShapeDtypeStruct((N, n_splits, 1, 128), jnp.float32),
                   jax.ShapeDtypeStruct((N, n_splits, 1, 128), jnp.int32)),
        grid_spec=pltpu.PrefetchScalarGridSpec(
            num_scalar_prefetch=0,
            grid=(N, n_splits, tiles_per_split),
            in_specs=[
                pl.BlockSpec((1, C, s_tile, 128), data_map),
                pl.BlockSpec((1, 1, s_tile, 128), data_map),
            ],
            out_specs=[
                pl.BlockSpec((1, 1, 1, 128), out_map),
                pl.BlockSpec((1, 1, 1, 128), out_map),
            ],
            scratch_shapes=[
                pltpu.VMEM((s_tile, 128), jnp.float32),
                pltpu.VMEM((s_tile, 128), jnp.int32),
            ],
        ),
        compiler_params=pltpu.CompilerParams(
            dimension_semantics=("parallel", "parallel", "arbitrary"),
            vmem_limit_bytes=int(vmem_cap * 0.9)),
    )(logits4, labels4)

    return jnp.sum(sum_out), jnp.sum(cnt_out)


def concat_cross_entropy_loss(dic_tmp, y, step=0, top_k_percent_pixels=None,
                              hard_example_mining_step=100000, tile_rows=None):
    """JAX/Pallas equivalent of Concat_CrossEntropyLoss.forward.

    dic_tmp : list of logits, each (N, C, H, W)
    y       : list of targets, each (N, H, W) int (255 = ignore)
    Returns a 1-D array of length len(dic_tmp) with the per-head mean CE loss.
    """
    # TODO(synk): top_k_percent_pixels (hard example mining / torch.topk) path
    # is not implemented; only the default reduction='mean' path is ported.
    assert top_k_percent_pixels is None

    losses = []
    for logits, gts in zip(dic_tmp, y):
        s, c = _masked_ce_sums(logits, gts, tile_rows=tile_rows)
        # c == 0 (all pixels ignored) -> NaN, matching PyTorch reduction='mean'.
        losses.append(s / c.astype(jnp.float32))
    return jnp.stack(losses, axis=0)


def _reference(dic_tmp, y):
    """Pure-JAX reference (nn.CrossEntropyLoss(ignore_index=255, reduction='mean'))."""
    out = []
    for logits, gts in zip(dic_tmp, y):
        N, C, H, W = logits.shape
        lg = jnp.transpose(logits, (0, 2, 3, 1)).reshape(-1, C).astype(jnp.float32)
        lb = gts.astype(jnp.int32).reshape(-1)
        logp = jax.nn.log_softmax(lg, axis=-1)
        valid = lb != IGNORE_INDEX
        safe_lb = jnp.where(valid, lb, 0)
        nll = -jnp.take_along_axis(logp, safe_lb[:, None], axis=1)[:, 0]
        nll = jnp.where(valid, nll, 0.0)
        out.append(jnp.sum(nll) / jnp.sum(valid.astype(jnp.float32)))
    return jnp.stack(out, axis=0)


def _make_head(key, N, C, H, W):
    k1, k2, k3 = jax.random.split(key, 3)
    logits = jax.random.normal(k1, (N, C, H, W), dtype=jnp.float32)
    labels = jax.random.randint(k2, (N, H, W), 0, C, dtype=jnp.int32)
    ignore_mask = jax.random.uniform(k3, (N, H, W)) < 0.1
    labels = jnp.where(ignore_mask, IGNORE_INDEX, labels)
    return logits, labels


if __name__ == "__main__":
    key = jax.random.PRNGKey(0)

    # 1) Basic path: two heads, N=2, C=4, 16x16 (HW=256 -> single tile).
    dic_tmp, y = [], []
    for _ in range(2):
        key, k = jax.random.split(key)
        logits, labels = _make_head(k, 2, 4, 16, 16)
        dic_tmp.append(logits)
        y.append(labels)
    loss = jax.block_until_ready(concat_cross_entropy_loss(dic_tmp, y, step=0))
    ref = _reference(dic_tmp, y)
    assert loss.shape == (2,)
    assert jnp.allclose(loss, ref, rtol=1e-5, atol=1e-5), (loss, ref)

    # 2) Ragged + split path: HW=2080 (pad to 2176), forced 8-row tiles ->
    #    3 row-blocks, 2 pixel splits (one masked step), ragged last block.
    key, k = jax.random.split(key)
    logits_r, labels_r = _make_head(k, 1, 4, 40, 52)
    loss_r = jax.block_until_ready(
        concat_cross_entropy_loss([logits_r], [labels_r], step=0, tile_rows=8))
    ref_r = _reference([logits_r], [labels_r])
    assert jnp.allclose(loss_r, ref_r, rtol=1e-5, atol=1e-5), (loss_r, ref_r)

    # 3) Larger class count (C=19) exercises the unrolled class loop.
    key, k = jax.random.split(key)
    logits_c, labels_c = _make_head(k, 1, 19, 24, 32)
    loss_c = jax.block_until_ready(
        concat_cross_entropy_loss([logits_c], [labels_c], step=0))
    ref_c = _reference([logits_c], [labels_c])
    assert jnp.allclose(loss_c, ref_c, rtol=1e-5, atol=1e-5), (loss_c, ref_c)

    print("KERNEL_OK")
</pallas_src>

<mosaic_0001>
module attributes {stable_mosaic.version = 11 : i64} {
  func.func @_ce_kernel(%arg0: i32, %arg1: i32, %arg2: i32, %arg3: memref<1x4x2x128xf32, #tpu.memory_space<vmem>>, %arg4: memref<1x1x2x128xi32, #tpu.memory_space<vmem>>, %arg5: memref<1x1x1x128xf32, #tpu.memory_space<vmem>>, %arg6: memref<1x1x1x128xi32, #tpu.memory_space<vmem>>, %arg7: memref<2x128xf32, #tpu.memory_space<vmem>>, %arg8: memref<2x128xi32, #tpu.memory_space<vmem>>) attributes {dimension_semantics = [#tpu.dimension_semantics<parallel>, #tpu.dimension_semantics<parallel>, #tpu.dimension_semantics<arbitrary>], iteration_bounds = array<i64: 2, 1, 1>, scalar_prefetch = 0 : i64, scratch_operands = 2 : i64, tpu.core_type = #tpu.core_type<tc>, window_params = [{transform_indices = @transform_0, window_bounds = array<i64: 1, 4, 2, 128>}, {transform_indices = @transform_1, window_bounds = array<i64: 1, 1, 2, 128>}, {transform_indices = @transform_2, window_bounds = array<i64: 1, 1, 1, 128>}, {transform_indices = @transform_3, window_bounds = array<i64: 1, 1, 1, 128>}]} {
    %c0_i32 = arith.constant 0 : i32
    %0 = arith.cmpi eq, %arg2, %c0_i32 : i32
    %1 = arith.extui %0 : i1 to i32
    %c0_i32_0 = arith.constant 0 : i32
    %2 = arith.cmpi ne, %1, %c0_i32_0 : i32
    scf.if %2 {
      %cst_44 = arith.constant 0.000000e+00 : f32
      %70 = vector.broadcast %cst_44 : f32 to vector<2x128xf32>
      %c0_45 = arith.constant 0 : index
      %c0_46 = arith.constant 0 : index
      %71 = vector.load %arg7[%c0_45, %c0_46] : memref<2x128xf32, #tpu.memory_space<vmem>>, vector<2x128xf32>
      tpu.vector_store %arg7[%c0_45, %c0_46], %70 {strides = array<i32>} : memref<2x128xf32, #tpu.memory_space<vmem>>, vector<2x128xf32>,
      %c0_i32_47 = arith.constant 0 : i32
      %72 = vector.broadcast %c0_i32_47 : i32 to vector<2x128xi32>
      %c0_48 = arith.constant 0 : index
      %c0_49 = arith.constant 0 : index
      %73 = vector.load %arg8[%c0_48, %c0_49] : memref<2x128xi32, #tpu.memory_space<vmem>>, vector<2x128xi32>
      tpu.vector_store %arg8[%c0_48, %c0_49], %72 {strides = array<i32>} : memref<2x128xi32, #tpu.memory_space<vmem>>, vector<2x128xi32>,
    } else {
    }
    %c0 = arith.constant 0 : index
    %c0_1 = arith.constant 0 : index
    %c0_2 = arith.constant 0 : index
    %c0_3 = arith.constant 0 : index
    %3 = vector.load %arg4[%c0, %c0_1, %c0_2, %c0_3] : memref<1x1x2x128xi32, #tpu.memory_space<vmem>>, vector<1x1x2x128xi32>
    %4 = vector.shape_cast %3 : vector<1x1x2x128xi32> to vector<2x128xi32>
    %c1_i32 = arith.constant 1 : i32
    %5 = arith.muli %arg1, %c1_i32 : i32
    %6 = arith.addi %5, %arg2 : i32
    %c2_i32 = arith.constant 2 : i32
    %7 = arith.muli %6, %c2_i32 : i32
    %8 = tpu.iota {dimensions = array<i32: 0>} : vector<2x128xi32>
    %9 = vector.broadcast %7 : i32 to vector<2x128xi32>
    %10 = arith.addi %9, %8 : vector<2x128xi32>
    %c0_i32_4 = arith.constant 0 : i32
    %11 = arith.cmpi eq, %arg1, %c0_i32_4 : i32
    %c2_i32_5 = arith.constant 2 : i32
    %c2_i32_6 = arith.constant 2 : i32
    %12 = arith.select %11, %c2_i32_5, %c2_i32_6 : i32
    %c255_i32 = arith.constant 255 : i32
    %13 = vector.broadcast %c255_i32 : i32 to vector<2x128xi32>
    %14 = arith.cmpi ne, %4, %13 : vector<2x128xi32>
    %15 = vector.broadcast %12 : i32 to vector<2x128xi32>
    %16 = arith.cmpi slt, %10, %15 : vector<2x128xi32>
    %17 = arith.andi %14, %16 : vector<2x128xi1>
    %c0_7 = arith.constant 0 : index
    %c0_8 = arith.constant 0 : index
    %c0_9 = arith.constant 0 : index
    %c0_10 = arith.constant 0 : index
    %18 = vector.load %arg3[%c0_7, %c0_8, %c0_9, %c0_10] : memref<1x4x2x128xf32, #tpu.memory_space<vmem>>, vector<1x1x2x128xf32>
    %19 = vector.shape_cast %18 : vector<1x1x2x128xf32> to vector<2x128xf32>
    %c0_11 = arith.constant 0 : index
    %c1 = arith.constant 1 : index
    %c0_12 = arith.constant 0 : index
    %c0_13 = arith.constant 0 : index
    %20 = vector.load %arg3[%c0_11, %c1, %c0_12, %c0_13] : memref<1x4x2x128xf32, #tpu.memory_space<vmem>>, vector<1x1x2x128xf32>
    %21 = vector.shape_cast %20 : vector<1x1x2x128xf32> to vector<2x128xf32>
    %22 = arith.maximumf %19, %21 : vector<2x128xf32>
    %c0_14 = arith.constant 0 : index
    %c2 = arith.constant 2 : index
    %c0_15 = arith.constant 0 : index
    %c0_16 = arith.constant 0 : index
    %23 = vector.load %arg3[%c0_14, %c2, %c0_15, %c0_16] : memref<1x4x2x128xf32, #tpu.memory_space<vmem>>, vector<1x1x2x128xf32>
    %24 = vector.shape_cast %23 : vector<1x1x2x128xf32> to vector<2x128xf32>
    %25 = arith.maximumf %22, %24 : vector<2x128xf32>
    %c0_17 = arith.constant 0 : index
    %c3 = arith.constant 3 : index
    %c0_18 = arith.constant 0 : index
    %c0_19 = arith.constant 0 : index
    %26 = vector.load %arg3[%c0_17, %c3, %c0_18, %c0_19] : memref<1x4x2x128xf32, #tpu.memory_space<vmem>>, vector<1x1x2x128xf32>
    %27 = vector.shape_cast %26 : vector<1x1x2x128xf32> to vector<2x128xf32>
    %28 = arith.maximumf %25, %27 : vector<2x128xf32>
    %29 = arith.subf %19, %28 : vector<2x128xf32>
    %30 = math.exp %29 : vector<2x128xf32>
    %c0_20 = arith.constant 0 : index
    %c1_21 = arith.constant 1 : index
    %c0_22 = arith.constant 0 : index
    %c0_23 = arith.constant 0 : index
    %31 = vector.load %arg3[%c0_20, %c1_21, %c0_22, %c0_23] : memref<1x4x2x128xf32, #tpu.memory_space<vmem>>, vector<1x1x2x128xf32>
    %32 = vector.shape_cast %31 : vector<1x1x2x128xf32> to vector<2x128xf32>
    %33 = arith.subf %32, %28 : vector<2x128xf32>
    %34 = math.exp %33 : vector<2x128xf32>
    %35 = arith.addf %30, %34 : vector<2x128xf32>
    %c1_i32_24 = arith.constant 1 : i32
    %36 = vector.broadcast %c1_i32_24 : i32 to vector<2x128xi32>
    %37 = arith.cmpi eq, %4, %36 : vector<2x128xi32>
    %38 = arith.select %37, %32, %19 : vector<2x128xi1>, vector<2x128xf32>
    %c0_25 = arith.constant 0 : index
    %c2_26 = arith.constant 2 : index
    %c0_27 = arith.constant 0 : index
    %c0_28 = arith.constant 0 : index
    %39 = vector.load %arg3[%c0_25, %c2_26, %c0_27, %c0_28] : memref<1x4x2x128xf32, #tpu.memory_space<vmem>>, vector<1x1x2x128xf32>
    %40 = vector.shape_cast %39 : vector<1x1x2x128xf32> to vector<2x128xf32>
    %41 = arith.subf %40, %28 : vector<2x128xf32>
    %42 = math.exp %41 : vector<2x128xf32>
    %43 = arith.addf %35, %42 : vector<2x128xf32>
    %c2_i32_29 = arith.constant 2 : i32
    %44 = vector.broadcast %c2_i32_29 : i32 to vector<2x128xi32>
    %45 = arith.cmpi eq, %4, %44 : vector<2x128xi32>
    %46 = arith.select %45, %40, %38 : vector<2x128xi1>, vector<2x128xf32>
    %c0_30 = arith.constant 0 : index
    %c3_31 = arith.constant 3 : index
    %c0_32 = arith.constant 0 : index
    %c0_33 = arith.constant 0 : index
    %47 = vector.load %arg3[%c0_30, %c3_31, %c0_32, %c0_33] : memref<1x4x2x128xf32, #tpu.memory_space<vmem>>, vector<1x1x2x128xf32>
    %48 = vector.shape_cast %47 : vector<1x1x2x128xf32> to vector<2x128xf32>
    %49 = arith.subf %48, %28 : vector<2x128xf32>
    %50 = math.exp %49 : vector<2x128xf32>
    %51 = arith.addf %43, %50 : vector<2x128xf32>
    %c3_i32 = arith.constant 3 : i32
    %52 = vector.broadcast %c3_i32 : i32 to vector<2x128xi32>
    %53 = arith.cmpi eq, %4, %52 : vector<2x128xi32>
    %54 = arith.select %53, %48, %46 : vector<2x128xi1>, vector<2x128xf32>
    %55 = math.log %51 : vector<2x128xf32>
    %56 = arith.addf %28, %55 : vector<2x128xf32>
    %57 = arith.subf %56, %54 : vector<2x128xf32>
    %cst = arith.constant 0.000000e+00 : f32
    %58 = vector.broadcast %cst : f32 to vector<2x128xf32>
    %59 = arith.select %17, %57, %58 : vector<2x128xi1>, vector<2x128xf32>
    %c0_34 = arith.constant 0 : index
    %c0_35 = arith.constant 0 : index
    %60 = vector.load %arg7[%c0_34, %c0_35] : memref<2x128xf32, #tpu.memory_space<vmem>>, vector<2x128xf32>
    %61 = arith.addf %60, %59 : vector<2x128xf32>
    %c0_36 = arith.constant 0 : index
    %c0_37 = arith.constant 0 : index
    %62 = vector.load %arg7[%c0_36, %c0_37] : memref<2x128xf32, #tpu.memory_space<vmem>>, vector<2x128xf32>
    tpu.vector_store %arg7[%c0_36, %c0_37], %61 {strides = array<i32>} : memref<2x128xf32, #tpu.memory_space<vmem>>, vector<2x128xf32>,
    %c0_38 = arith.constant 0 : index
    %c0_39 = arith.constant 0 : index
    %63 = vector.load %arg8[%c0_38, %c0_39] : memref<2x128xi32, #tpu.memory_space<vmem>>, vector<2x128xi32>
    %64 = arith.extui %17 : vector<2x128xi1> to vector<2x128xi32>
    %65 = arith.addi %63, %64 : vector<2x128xi32>
    %c0_40 = arith.constant 0 : index
    %c0_41 = arith.constant 0 : index
    %66 = vector.load %arg8[%c0_40, %c0_41] : memref<2x128xi32, #tpu.memory_space<vmem>>, vector<2x128xi32>
    tpu.vector_store %arg8[%c0_40, %c0_41], %65 {strides = array<i32>} : memref<2x128xi32, #tpu.memory_space<vmem>>, vector<2x128xi32>,
    %c0_i32_42 = arith.constant 0 : i32
    %67 = arith.cmpi eq, %arg2, %c0_i32_42 : i32
    %68 = arith.extui %67 : i1 to i32
    %c0_i32_43 = arith.constant 0 : i32
    %69 = arith.cmpi ne, %68, %c0_i32_43 : i32
    scf.if %69 {
      %c0_44 = arith.constant 0 : index
      %c0_45 = arith.constant 0 : index
      %70 = vector.load %arg7[%c0_44, %c0_45] : memref<2x128xf32, #tpu.memory_space<vmem>>, vector<2x128xf32>
      %cst_46 = arith.constant dense<0.000000e+00> : vector<128xf32>
      %71 = vector.multi_reduction <add>, %70, %cst_46 [0] : vector<2x128xf32> to vector<128xf32>
      %72 = vector.shape_cast %71 : vector<128xf32> to vector<1x128xf32>
      %73 = vector.shape_cast %72 : vector<1x128xf32> to vector<1x1x1x128xf32>
      %c0_47 = arith.constant 0 : index
      %c0_48 = arith.constant 0 : index
      %c0_49 = arith.constant 0 : index
      %c0_50 = arith.constant 0 : index
      %74 = vector.load %arg5[%c0_47, %c0_48, %c0_49, %c0_50] : memref<1x1x1x128xf32, #tpu.memory_space<vmem>>, vector<1x1x1x128xf32>
      tpu.vector_store %arg5[%c0_47, %c0_48, %c0_49, %c0_50], %73 {strides = array<i32>} : memref<1x1x1x128xf32, #tpu.memory_space<vmem>>, vector<1x1x1x128xf32>,
      %c0_51 = arith.constant 0 : index
      %c0_52 = arith.constant 0 : index
      %75 = vector.load %arg8[%c0_51, %c0_52] : memref<2x128xi32, #tpu.memory_space<vmem>>, vector<2x128xi32>
      %cst_53 = arith.constant dense<0> : vector<128xi32>
      %76 = vector.multi_reduction <add>, %75, %cst_53 [0] : vector<2x128xi32> to vector<128xi32>
      %77 = vector.shape_cast %76 : vector<128xi32> to vector<1x128xi32>
      %78 = vector.shape_cast %77 : vector<1x128xi32> to vector<1x1x1x128xi32>
      %c0_54 = arith.constant 0 : index
      %c0_55 = arith.constant 0 : index
      %c0_56 = arith.constant 0 : index
      %c0_57 = arith.constant 0 : index
      %79 = vector.load %arg6[%c0_54, %c0_55, %c0_56, %c0_57] : memref<1x1x1x128xi32, #tpu.memory_space<vmem>>, vector<1x1x1x128xi32>
      tpu.vector_store %arg6[%c0_54, %c0_55, %c0_56, %c0_57], %78 {strides = array<i32>} : memref<1x1x1x128xi32, #tpu.memory_space<vmem>>, vector<1x1x1x128xi32>,
    } else {
    }
    return
  }
  func.func @transform_0(%arg0: i32, %arg1: i32, %arg2: i32) -> (i32, i32, i32, i32) {
    %c1_i32 = arith.constant 1 : i32
    %0 = arith.muli %arg1, %c1_i32 : i32
    %1 = arith.addi %0, %arg2 : i32
    %c0_i32 = arith.constant 0 : i32
    %c0_i32_0 = arith.constant 0 : i32
    %c0_i32_1 = arith.constant 0 : i32
    return %arg0, %c0_i32, %1, %c0_i32_0 : i32, i32, i32, i32
  }
  func.func @transform_1(%arg0: i32, %arg1: i32, %arg2: i32) -> (i32, i32, i32, i32) {
    %c1_i32 = arith.constant 1 : i32
    %0 = arith.muli %arg1, %c1_i32 : i32
    %1 = arith.addi %0, %arg2 : i32
    %c0_i32 = arith.constant 0 : i32
    %c0_i32_0 = arith.constant 0 : i32
    %c0_i32_1 = arith.constant 0 : i32
    return %arg0, %c0_i32, %1, %c0_i32_0 : i32, i32, i32, i32
  }
  func.func @transform_2(%arg0: i32, %arg1: i32, %arg2: i32) -> (i32, i32, i32, i32) {
    %c0_i32 = arith.constant 0 : i32
    %c0_i32_0 = arith.constant 0 : i32
    %c0_i32_1 = arith.constant 0 : i32
    return %arg0, %arg1, %c0_i32, %c0_i32_0 : i32, i32, i32, i32
  }
  func.func @transform_3(%arg0: i32, %arg1: i32, %arg2: i32) -> (i32, i32, i32, i32) {
    %c0_i32 = arith.constant 0 : i32
    %c0_i32_0 = arith.constant 0 : i32
    %c0_i32_1 = arith.constant 0 : i32
    return %arg0, %arg1, %c0_i32, %c0_i32_0 : i32, i32, i32, i32
  }
}

</mosaic_0001>

<bundles_post_ra>
// kernel: tpu_custom_call.1
= control target key start
LH: loop header
LB: loop body
LE: loop exit
PB: predicated region body
PF: predicated region fallthrough
CT: control target
= control target key end

     0   :  { %9 = vsyncpa [#allocation5], 0  ;;  %s1127_s0 = inlined_call_operand.hbm [shape: f32[2,4,2,128], index: 0, kind: input, shape index: {}]   ;;  %s1128_s1 = inlined_call_operand.hbm [shape: s32[2,1,2,128], index: 1, kind: input, shape index: {}]   ;;  %s1129_s2 = inlined_call_operand.hbm [shape: f32[2,1,1,128], index: 2, kind: output, shape index: {0}]   ;;  %s1130_s3 = inlined_call_operand.hbm [shape: s32[2,1,1,128], index: 3, kind: output, shape index: {1}]  }
   0x1   :  { %11 = vsyncpa [#allocation5 + $0x1], 0 }
   0x2   :  { %12 = vsyncpa [#allocation8], 0 }
   0x3   :  { %14 = vsyncpa [#allocation8 + $0x1], 0 }
   0x4   :  { %15 = vsyncpa [#allocation6], 0 }
   0x5   :  { %17 = vsyncpa [#allocation6 + $0x1], 0 }
   0x6   :  { %18 = vsyncpa [#allocation11], 0 }
   0x7   :  { %20 = vsyncpa [#allocation11 + $0x1], 0  ;;  %s834_s12 = smov 0   ;;  %s836_s13 = smov 0  }
   0x8   :  { %s838_s14 = smov 0   ;;  %s840_s15 = smov 0  }
   0x9   :  { %s842_s16 = smov 0   ;;  %s844_s17 = smov 0  }
   0xa LB: > { %s520_s18 = sadd.s32 4294967295, %s804_s17   ;;  %s521_s19 = sadd.s32 4294967294, %s804_s17   ;;  %s804_s17 = sphi %s844_s17, %s26_s17   ;;  %s800_s16 = sphi %s842_s16, %s1151_s16   ;;  %s796_s15 = sphi %s840_s15, %s1150_s15   ;;  %s792_s14 = sphi %s838_s14, %s1149_s14   ;;  %s788_s13 = sphi %s836_s13, %s1148_s13   ;;  %s784_s12 = sphi %s834_s12, %s1147_s12  }
   0xb   : > { %s45_s20 = sadd.s32 1, %s800_s16  ;;  %s56_s21 = sadd.s32 1, %s792_s14 }
   0xc   : > { %p47_p0 = scmp.ge.s32.totalorder %s45_s20, 2  ;;  %p63_p1 = scmp.ne.s32.totalorder %s792_s14, %s788_s13 }
   0xd   : > { %p64_p2 = scmp.eq.s32.totalorder %s804_s17, 0  ;;  %p69_p3 = scmp.ne.s32.totalorder %s788_s13, %s784_s12 }
   0xe   : > { %s1153_s20 = smov (%p47_p0, %s45_s20), 0  ;;  %p70_p5 = scmp.eq.s32.totalorder %s520_s18, 0 }
   0xf   : > { %p875_p4 = por %p64_p2, %p63_p1  ;;  %s51_s23 = ssub.s32 %s800_s16, %s1153_s20 }
  0x10   : > { %p125_p6 = scmp.eq.s32.totalorder %s520_s18, 1  ;;  %p54_p7 = scmp.eq.s32.totalorder %s51_s23, 0 }
  0x11   : > { %p881_p8 = por %p70_p5, %p69_p3  ;;  %p131_p10 = scmp.eq.s32.totalorder %s521_s19, 1 }
  0x12   : > { %p885_p9 = por %p125_p6, %p63_p1  ;;  %p562_p13 = scmp.lt.s32.totalorder %s804_s17, 2 }
  0x13   : > { %s1134_s24 = scalar_select %p881_p8, 1, 0 }
  0x14   : > { %s1135_s25 = scalar_select %p885_p9, 1, 0 }
  0x15   : > { %s890_s26 = scalar_select %p54_p7, %s792_s14, %s56_s21  }
  0x16   : > { %p892_p11 = por %p131_p10, %p69_p3  ;;  %s899_s28 = sand.u32 1, %s792_s14  }
  0x17   : > { %s524_s29 = sshll.u32 %s899_s28, 3  ;;  %s539_s30 = sshll.u32 %s800_s16, 7 }
  0x18   : > { %s1136_s27 = scalar_select %p892_p11, 1, 0 }
  0x19   : > { %s906_s6 = scalar_lea.hbm %s1127_s0, %s539_s30  ;;  %s183_s7 = scalar_lea.vmem [#allocation4], %s524_s29 }
  0x1a   : > { %s192_s8 = sshll.u32 %s183_s7, 4  ;;  %p912_p0 = pnand %p562_p13, %p875_p4  ;;  %s908_s8 = int_to_ptr.vmem [resolvable:$true] %s192_s8 }
  0x1b   : > { %s180_s10 = scalar_lea.sflag [#allocation5], %s899_s28  ;;  %s626_s11 = scalar_lea.hbm %s906_s6, 128 }
  0x1c   : > { %p627_p2 = scmp.ne.s32.totalorder %s906_s6, %s626_s11  ;;  %p628_p3 = pneg %p912_p0 }
  0x1d   : > { %s631_s21 = scalar_lea.hbm %s1127_s0, 256  ;;  %p632_p4 = scmp.lt.u32.totalorder %s906_s6, %s1127_s0 }
  0x1e   : > { %p629_p5 = pnand %p628_p3, %p627_p2  ;;  %p633_p7 = scmp.lt.u32.totalorder %s631_s21, %s626_s11 }
  0x1f   : > { %p635_p13 = scmp.lt.u32.totalorder %s626_s11, %s906_s6 }
  0x20   : > { %p630_p6 = pneg %p629_p5  ;;  %p634_p10 = por %p633_p7, %p632_p4 }
  0x22   : > { %p636_p12 = por %p635_p13, %p634_p10 }
  0x24   : > { %p637_p1 = pnand %p636_p12, %p630_p6 }
  0x26   : > { %640 = shalt.err (!%p637_p1)
}
  0x27   : > { %s641_s29 = scalar_lea.vmem %s908_s8, 128  ;;  %s806_s30 = smov [#allocation4]  }
  0x28   : > { %p642_p2 = scmp.ne.s32.totalorder %s908_s8, %s641_s29  ;;  %s646_s4 = sshll.u32 %s806_s30, 4  ;;  %s647_s4 = int_to_ptr.vmem [resolvable:$false] %s646_s4 }
  0x29   : > { %s648_s5 = scalar_lea.vmem %s647_s4, 256  ;;  %p649_p9 = scmp.lt.s32.totalorder %s908_s8, %s647_s4 }
  0x2a   : > { %p644_p5 = pnand %p642_p2, %p628_p3  ;;  %p650_p4 = scmp.lt.s32.totalorder %s648_s5, %s641_s29 }
  0x2c   : > { %p645_p11 = pneg %p644_p5  ;;  %p651_p7 = por %p650_p4, %p649_p9 }
  0x2e   : > { %p652_p10 = pnand %p651_p7, %p645_p11 }
  0x30   : > { %655 = shalt.err (!%p652_p10)
}
  0x31   : > { %s807_s7 = smov 32   ;;  %s808_s11 = smov 2  }
  0x32   : > { %551 = dma.hbm_to_vmem [thread:$0]  (!%p912_p0), %s906_s6, 128, %s908_s8, %s180_s10, %s807_s7, %s807_s7, %s808_s11  }
  0x33   : > { %p220_p12 = scmp.lt.s32.totalorder %s804_s17, 3  ;;  %s527_s18 = sshll.u32 %s899_s28, 1 }
  0x34   : > { %s528_s19 = sshll.u32 %s800_s16, 5  ;;  %p1138_p9 = scmp.ge.s32.totalorder %s804_s17, 1 }
  0x35   : > { %s957_s29 = scalar_lea.hbm %s1128_s1, %s528_s19  ;;  %s206_s30 = scalar_lea.vmem [#allocation7], %s527_s18 }
  0x36   : > { %p950_p11 = pnand %p1138_p9, %p220_p12  ;;  %s215_s4 = sshll.u32 %s206_s30, 4  ;;  %s216_s4 = int_to_ptr.vmem [resolvable:$true] %s215_s4 }
  0x37   : > { %s203_s6 = scalar_lea.sflag [#allocation8], %s899_s28  ;;  %s656_s8 = scalar_lea.hbm %s957_s29, 32 }
  0x38   : > { %s1139_s21 = scalar_select %p950_p11, 1, 0 }
  0x39   : > { %p657_p1 = scmp.ne.s32.totalorder %s957_s29, %s656_s8  ;;  %s661_s7 = scalar_lea.hbm %s1128_s1, 64 }
  0x3a   : > { %p662_p2 = scmp.lt.u32.totalorder %s957_s29, %s1128_s1  ;;  %p663_p5 = scmp.lt.u32.totalorder %s661_s7, %s656_s8 }
  0x3b   : > { %p659_p6 = pnand %p657_p1, %p628_p3  ;;  %p665_p7 = scmp.lt.u32.totalorder %s656_s8, %s957_s29 }
  0x3c   : > { %p664_p4 = por %p663_p5, %p662_p2 }
  0x3d   : > { %p660_p13 = pneg %p659_p6 }
  0x3e   : > { %p666_p10 = por %p665_p7, %p664_p4 }
  0x40   : > { %p667_p12 = pnand %p666_p10, %p660_p13 }
  0x42   : > { %670 = shalt.err (!%p667_p12)
}
  0x43   : > { %s671_s28 = scalar_lea.vmem %s216_s4, 32  ;;  %s809_s18 = smov [#allocation7]  }
  0x44   : > { %p672_p9 = scmp.ne.s32.totalorder %s216_s4, %s671_s28  ;;  %s676_s22 = sshll.u32 %s809_s18, 4  ;;  %s677_s22 = int_to_ptr.vmem [resolvable:$false] %s676_s22 }
  0x45   : > { %s678_s23 = scalar_lea.vmem %s677_s22, 64  ;;  %p679_p8 = scmp.lt.s32.totalorder %s216_s4, %s677_s22 }
  0x46   : > { %p674_p1 = pnand %p672_p9, %p628_p3  ;;  %p680_p11 = scmp.lt.s32.totalorder %s678_s23, %s671_s28 }
  0x48   : > { %p675_p6 = pneg %p674_p1  ;;  %p681_p2 = por %p680_p11, %p679_p8 }
  0x4a   : > { %p682_p5 = pnand %p681_p2, %p675_p6 }
  0x4c   : > { %685 = shalt.err (!%p682_p5)
}
  0x4d   : > { %554 = dma.hbm_to_vmem [thread:$0]  (!%p912_p0), %s957_s29, 32, %s216_s4, %s203_s6  }
  0x4e   : > { %p1140_p13 = scmp.ne.s32.totalorder %s1139_s21, 0 }
  0x4f   : > { %s982_s30 = sand.u32 (!%p1140_p13), 1, %s788_s13   ;;  %p1141_p3 = scmp.ne.s32.totalorder (!%p1140_p13), %s1134_s24, 0 }
  0x50   : > { %224 = sbr.rel (%p1140_p13) target bundleno = 191 (0xbf), region = 28  ;;  %s530_s8 = sshll.u32 (!%p1140_p13), %s982_s30, 3 }
  0x51   : > { %s227_s10 = scalar_lea.sflag (!%p1140_p13), [#allocation5], %s982_s30  ;;  %s230_s5 = scalar_lea.vmem (!%p1140_p13), [#allocation4], %s530_s8 }
  0x57   : > { %767 = dma.done.wait (%p1141_p3), %s227_s10, 128  }
  0x58   : > { %769 = vsyncadd (%p1141_p3), %s227_s10, 4294967168  ;;  %s531_s9 = sshll.u32 %s982_s30, 1  ;;  %s236_s21 = scalar_lea.sflag [#allocation8], %s982_s30 }
  0x59   : > { %s239_s29 = scalar_lea.vmem [#allocation7], %s531_s9 }
  0x5a   : > { %771 = dma.done.wait (%p1141_p3), %s236_s21, 32  }
  0x5b   : > { %773 = vsyncadd (%p1141_p3), %s236_s21, 4294967264  ;;  %v281_v0 = vlaneseq  ;;  %v810_v1 = vmov 0   ;;  %v811_v2 = vmov 0.0   ;;  %v996_v4 = vld [vmem:[%s239_s29] sm:$0x3]  ;;  %vm335_vm3 = vcmask 1041408  }
  0x5c   : > { %277 = vst [vmem:[#allocation3] sm:$0x3] %v810_v1  ;;  %276 = vst [vmem:[#allocation2] sm:$0x3] %v811_v2  ;;  %v998_v5 = vld [vmem:[%s230_s5] sm:$0x3] }
  0x5d   : > { %v282_v3 = vshrl.u32 %v281_v0, 7  ;;  %v1000_v6 = vld [vmem:[%s230_s5 + $0x2] sm:$0x3]  ;;  %vm285_vm1 = vcmp.ne.s32.totalorder %v996_v4, 255  ;;  %v1005_v8 = vld [vmem:[%s230_s5 + $0x4] sm:$0x3] }
  0x5e   : > { %v291_v7 = vmax.f32 %v998_v5, %v1000_v6  ;;  %v1011_v10 = vld [vmem:[%s230_s5 + $0x6] sm:$0x3]  ;;  %s269_s24 = scalar_lea.vmem [#allocation10], %s982_s30  ;;  %s535_s6 = sshll.u32 %s796_s15, 4 }
  0x5f   : > { %vm286_vm0 = vcmp.lt.s32.totalorder %v282_v3, 2  ;;  %s385_s4 = sshll.u32 %s269_s24, 4  ;;  %s1037_s19 = scalar_lea.hbm %s1130_s3, %s535_s6  ;;  %s1030_s4 = int_to_ptr.vmem [resolvable:$true] %s385_s4 }
  0x60   : > { %vm1007_vm2 = vmand %vm285_vm1, %vm286_vm0  ;;  %v294_v12 = vmax.f32 %v291_v7, %v1005_v8  ;;  %s358_s28 = scalar_lea.sflag [#allocation11], %s982_s30  ;;  %s686_s18 = scalar_lea.vmem %s1030_s4, 16 }
  0x61   : > { %v328_v13 = vsel %vm1007_vm2, 1, %v810_v1  ;;  %p687_p8 = scmp.ne.s32.totalorder %s1030_s4, %s686_s18  ;;  %p1144_p0 = scmp.ne.s32.totalorder %s1135_s25, 0 }
  0x62   : > { %v1017_v15 = vmax.f32 %v294_v12, %v1011_v10  ;;  %s812_s22 = smov [#allocation10]  }
  0x63   : > { %v327_v11 = vld [vmem:[#allocation3] sm:$0x3]  ;;  %p688_p11 = pnand %p687_p8, %p1144_p0  ;;  %s690_s23 = sshll.u32 %s812_s22, 4  ;;  %s691_s23 = int_to_ptr.vmem [resolvable:$false] %s690_s23 }
  0x64   : > { %v329_v14 = vadd.s32 %v328_v13, %v327_v11  ;;  %v298_v16 = vsub.f32 %v998_v5, %v1017_v15  ;;  %v301_v17 = vsub.f32 %v1000_v6, %v1017_v15  ;;  %v307_v18 = vsub.f32 %v1005_v8, %v1017_v15  ;;  %s692_s8 = scalar_lea.vmem %s691_s23, 32  ;;  %p693_p7 = scmp.lt.s32.totalorder %s1030_s4, %s691_s23 }
  0x65   : > { %v313_v19 = vsub.f32 %v1011_v10, %v1017_v15  ;;  %p689_p4 = pneg %p688_p11  ;;  %p694_p10 = scmp.lt.s32.totalorder %s692_s8, %s686_s18 }
  0x66   : > { %330 = vst [vmem:[#allocation3] sm:$0x3] %v329_v14  ;;  %v299_v20 = vmul.f32 1.442695, %v298_v16  ;;  %v302_v21 = vmul.f32 1.442695, %v301_v17 }
  0x67   : > { %v308_v22 = vmul.f32 1.442695, %v307_v18  ;;  %v314_v23 = vmul.f32 1.442695, %v313_v19  ;;  %p695_p12 = por %p694_p10, %p693_p7 }
  0x68   : > { %616 = vpow2.f32 %v299_v20 }
  0x69   : > { %618 = vpow2.f32 %v302_v21  ;;  %p696_p9 = pnand %p695_p12, %p689_p4 }
  0x6a   : > { %620 = vpow2.f32 %v308_v22 }
  0x6b   : > { %622 = vpow2.f32 %v314_v23 }
  0x6d   : > { %v344_v24 = vld [vmem:[#allocation3] sm:$0x3] }
  0x6e   : > { %v345_v25 = vsel %vm335_vm3, %v344_v24, 0 }
  0x6f   : > { %v346_v26 = vrot.slane %v345_v25, 4 }
  0x71   : > { %v347_v27 = vadd.s32 %v346_v26, %v345_v25 }
  0x72   : > { %v617_v29 = vpop.eup %616 }
  0x73   : > { %v348_v28 = vrot.slane %v347_v27, 2  ;;  %v619_v31 = vpop.eup %618 }
  0x74   : > { %v621_v32 = vpop.eup %620  ;;  %v304_v33 = vadd.f32 %v619_v31, %v617_v29 }
  0x75   : > { %v349_v30 = vadd.s32 %v348_v28, %v347_v27  ;;  %v623_v35 = vpop.eup %622 }
  0x76   : > { %v310_v36 = vadd.f32 %v621_v32, %v304_v33 }
  0x77   : > { %v350_v34 = vrot.slane %v349_v30, 1 }
  0x78   : > { %v316_v38 = vadd.f32 %v623_v35, %v310_v36 }
  0x79   : > { %v351_v37 = vadd.s32 %v350_v34, %v349_v30 }
  0x7b   : > { %352 = vst [vmem:[%s269_s24] sm:$0x1] %v351_v37 }
  0x7c   : > { %699 = shalt.err (!%p696_p9)
}
  0x7d   : > { %s700_s10 = scalar_lea.hbm %s1037_s19, 16  ;;  %s704_s21 = scalar_lea.hbm %s1130_s3, 32 }
  0x7e   : > { %p701_p1 = scmp.ne.s32.totalorder %s1037_s19, %s700_s10  ;;  %p705_p5 = scmp.lt.u32.totalorder %s1037_s19, %s1130_s3 }
  0x7f   : > { %p706_p13 = scmp.lt.u32.totalorder %s704_s21, %s700_s10  ;;  %p708_p8 = scmp.lt.u32.totalorder %s700_s10, %s1037_s19 }
  0x80   : > { %p702_p6 = pnand %p701_p1, %p1144_p0 }
  0x81   : > { %p707_p3 = por %p706_p13, %p705_p5 }
  0x82   : > { %p703_p2 = pneg %p702_p6 }
  0x83   : > { %p709_p11 = por %p708_p8, %p707_p3 }
  0x85   : > { %p710_p4 = pnand %p709_p11, %p703_p2 }
  0x87   : > { %713 = shalt.err (!%p710_p4)
}
  0x88   : > { %545 = dma.vmem_to_hbm [thread:$0]  (%p1144_p0), %s1030_s4, 16, %s1037_s19, %s358_s28   ;;  %624 = vlog2.f32 %v316_v38  ;;  %vm305_vm4 = vcmp.eq.s32.totalorder %v996_v4, 1  ;;  %vm311_vm5 = vcmp.eq.s32.totalorder %v996_v4, 2  ;;  %vm317_vm6 = vcmp.eq.s32.totalorder %v996_v4, 3  ;;  %v324_v46 = vld [vmem:[#allocation2] sm:$0x3] }
  0x89   : > { %v306_v39 = vsel %vm305_vm4, %v1000_v6, %v998_v5  ;;  %s263_s4 = scalar_lea.vmem [#allocation9], %s982_s30  ;;  %s1080_s28 = scalar_lea.hbm %s1129_s2, %s535_s6 }
  0x8a   : > { %v312_v40 = vsel %vm311_vm5, %v1005_v8, %v306_v39  ;;  %s371_s7 = sshll.u32 %s263_s4, 4  ;;  %s354_s18 = scalar_lea.sflag [#allocation6], %s982_s30  ;;  %s1073_s7 = int_to_ptr.vmem [resolvable:$true] %s371_s7 }
  0x8b   : > { %v318_v43 = vsel %vm317_vm6, %v1011_v10, %v312_v40  ;;  %s714_s22 = scalar_lea.vmem %s1073_s7, 16  ;;  %s813_s23 = smov [#allocation9]  }
  0x8c   : > { %p715_p7 = scmp.ne.s32.totalorder %s1073_s7, %s714_s22  ;;  %s718_s8 = sshll.u32 %s813_s23, 4  ;;  %s719_s8 = int_to_ptr.vmem [resolvable:$false] %s718_s8 }
  0x8d   : > { %s720_s10 = scalar_lea.vmem %s719_s8, 32  ;;  %p721_p9 = scmp.lt.s32.totalorder %s1073_s7, %s719_s8 }
  0x8e   : > { %p716_p10 = pnand %p715_p7, %p1144_p0  ;;  %p722_p1 = scmp.lt.s32.totalorder %s720_s10, %s714_s22 }
  0x90   : > { %p717_p12 = pneg %p716_p10  ;;  %p723_p6 = por %p722_p1, %p721_p9 }
  0x92   : > { %v625_v41 = vpop.eup %624  ;;  %p724_p2 = pnand %p723_p6, %p717_p12 }
  0x93   : > { %v320_v42 = vmul.f32 0.6931472, %v625_v41 }
  0x95   : > { %v321_v44 = vadd.f32 %v320_v42, %v1017_v15 }
  0x97   : > { %v322_v45 = vsub.f32 %v321_v44, %v318_v43 }
  0x99   : > { %v323_v47 = vsel %vm1007_vm2, %v322_v45, 0.0 }
  0x9a   : > { %v325_v48 = vadd.f32 %v324_v46, %v323_v47 }
  0x9c   : > { %326 = vst [vmem:[#allocation2] sm:$0x3] %v325_v48 }
  0xa3   : > { %v334_v49 = vld [vmem:[#allocation2] sm:$0x3] }
  0xa4   : > { %v336_v50 = vsel %vm335_vm3, %v334_v49, 0.0 }
  0xa5   : > { %v337_v51 = vrot.slane %v336_v50, 4 }
  0xa7   : > { %v338_v52 = vadd.f32 %v337_v51, %v336_v50 }
  0xa9   : > { %v339_v53 = vrot.slane %v338_v52, 2 }
  0xab   : > { %v340_v54 = vadd.f32 %v339_v53, %v338_v52 }
  0xad   : > { %v341_v55 = vrot.slane %v340_v54, 1 }
  0xaf   : > { %v342_v56 = vadd.f32 %v341_v55, %v340_v54 }
  0xb1   : > { %343 = vst [vmem:[%s263_s4] sm:$0x1] %v342_v56 }
  0xb2   : > { %727 = shalt.err (!%p724_p2)
}
  0xb3   : > { %s728_s15 = scalar_lea.hbm %s1080_s28, 16  ;;  %s732_s5 = scalar_lea.hbm %s1129_s2, 32 }
  0xb4   : > { %p729_p5 = scmp.ne.s32.totalorder %s1080_s28, %s728_s15  ;;  %p733_p8 = scmp.lt.u32.totalorder %s1080_s28, %s1129_s2 }
  0xb5   : > { %p734_p11 = scmp.lt.u32.totalorder %s732_s5, %s728_s15  ;;  %p736_p7 = scmp.lt.u32.totalorder %s728_s15, %s1080_s28 }
  0xb6   : > { %p730_p13 = pnand %p729_p5, %p1144_p0 }
  0xb7   : > { %p735_p4 = por %p734_p11, %p733_p8 }
  0xb8   : > { %p731_p3 = pneg %p730_p13 }
  0xb9   : > { %p737_p10 = por %p736_p7, %p735_p4 }
  0xbb   : > { %p738_p12 = pnand %p737_p10, %p731_p3 }
  0xbd   : > { %741 = shalt.err (!%p738_p12)
}
  0xbe   : > { %544 = dma.vmem_to_hbm [thread:$0]  (%p1144_p0), %s1073_s7, 16, %s1080_s28, %s354_s18  }
  0xbf PF: > { %s397_s29 = sand.u32 1, %s784_s12   ;;  %p1145_p9 = scmp.ne.s32.totalorder %s1136_s27, 0 }
  0xc0   : > { %p1146_p1 = scmp.ge.s32.totalorder %s804_s17, 2  ;;  %s398_s24 = scalar_lea.sflag [#allocation6], %s397_s29 }
  0xc2   : > { %p556_p6 = pnand %p1146_p1, %p1145_p9 }
  0xc4   : > { %775 = dma.done.wait (!%p556_p6), %s398_s24, 16  }
  0xc5   : > { %777 = vsyncadd (!%p556_p6), %s398_s24, 4294967280  ;;  %s406_s4 = scalar_lea.sflag [#allocation11], %s397_s29 }
  0xc6   : > { %779 = dma.done.wait (!%p556_p6), %s406_s4, 16  }
  0xc7   : > { %781 = vsyncadd (!%p556_p6), %s406_s4, 4294967280  ;;  %s26_s17 = sadd.s32 1, %s804_s17   ;;  %s1147_s12 = smov %s788_s13 }
  0xc8   : > { %p23_p2 = scmp.ge.s32.totalorder %s26_s17, 4   ;;  %s1148_s13 = smov %s792_s14 }
  0xc9   : > { %s1149_s14 = smov %s890_s26  ;;  %s1150_s15 = smov %s800_s16 }
  0xca   : > { %s1151_s16 = smov %s1153_s20  ;;  %25 = sbr.rel (!%p23_p2) target bundleno = 10 (0xa), region = 114 }
  0xd1   :  { %410 = vsyncpa [#allocation5], 1 }
  0xd2   :  { %412 = vsyncpa [#allocation5 + $0x1], 1 }
  0xd3   :  { %413 = vsyncpa [#allocation8], 1 }
  0xd4   :  { %415 = vsyncpa [#allocation8 + $0x1], 1 }
  0xd5   :  { %416 = vsyncpa [#allocation6], 1 }
  0xd6   :  { %418 = vsyncpa [#allocation6 + $0x1], 1 }
  0xd7   :  { %419 = vsyncpa [#allocation11], 1 }
  0xd8   :  { %421 = vsyncpa [#allocation11 + $0x1], 1 }

</bundles_post_ra>
